<compile_context>
chip_gen: v5e
topology: v5e:2x2
jax: 0.10.0
libtpu: 0.0.40
codegen_flags: <defaults>
</compile_context>

<pallas_src>
import functools

import jax
import jax.numpy as jnp
from jax.experimental import pallas as pl
from jax.experimental.pallas import tpu as pltpu

EPS = 1e-3  # matches nn.BatchNorm3d(eps=0.001)


# ----------------------------- Pallas kernel ------------------------------ #
def _shifted_tap_conv_kernel(x_ref, xh_ref, w_ref, b_ref, o_ref, *,
                             offsets, tile_m):
    """One (Cout, tile_m) output tile of shifted-tap conv + BN bias + ReLU.

    x_ref : (Cin, tile_m)        current slab of the flattened position axis
    xh_ref: (Cin, halo)          first `halo` columns of the next slab
    w_ref : (n_taps, Cout, Cin)  BN-scale-folded weights (one matrix per tap)
    b_ref : (Cout, 1)            folded BN bias
    o_ref : (Cout, tile_m)       lane-dense output tile
    """
    x = jnp.concatenate([x_ref[...], xh_ref[...]], axis=1)  # (Cin, tile_m+halo)
    acc = jnp.zeros(o_ref.shape, jnp.float32)
    for t, off in enumerate(offsets):          # fully unrolled (static offsets)
        xt = x[:, off:off + tile_m]            # (Cin, tile_m) shifted window
        acc = acc + jnp.dot(w_ref[t], xt, preferred_element_type=jnp.float32)
    o_ref[...] = jnp.maximum(acc + b_ref[...], 0.0).astype(o_ref.dtype)


def shifted_tap_conv_bn_relu(x2, w_taps, bias, offsets, *, tile_m=512):
    """out[co, m] = relu(sum_t w_taps[t,co,:] @ x2[:, m+offsets[t]] + bias[co]).

    x2: (Cin, P_valid) f32; w_taps: (n_taps, Cout, Cin); bias: (Cout,).
    Returns (Cout, P_valid) f32.
    """
    cin, p_valid = x2.shape
    n_taps, cout, cin2 = w_taps.shape
    assert cin == cin2 and len(offsets) == n_taps
    max_off = int(max(offsets))

    # Halo block: smallest power-of-two multiple of 128 covering max_off; it
    # must divide tile_m so its block index is expressible in its own units.
    halo = 128
    while halo < max_off:
        halo *= 2
    tile_m = max(tile_m, halo)
    assert tile_m % halo == 0 and tile_m % 128 == 0

    # Enough tiles that every *valid* position's reads stay inside
    # (its own tile) + (the true next-tile halo); >=2 tiles for megacore.
    num_tiles = max(int(pl.cdiv(p_valid + max_off, tile_m)), 2)
    p_pad = num_tiles * tile_m
    x2p = jnp.pad(x2.astype(jnp.float32), ((0, 0), (0, p_pad - p_valid)))

    ratio = tile_m // halo
    last_halo = p_pad // halo - 1

    kernel = functools.partial(_shifted_tap_conv_kernel,
                               offsets=tuple(int(o) for o in offsets),
                               tile_m=tile_m)
    out = pl.pallas_call(
        kernel,
        out_shape=jax.ShapeDtypeStruct((cout, p_pad), jnp.float32),
        grid_spec=pltpu.PrefetchScalarGridSpec(
            num_scalar_prefetch=0,
            grid=(num_tiles,),
            in_specs=[
                # current slab
                pl.BlockSpec((cin, tile_m), lambda i: (0, i)),
                # halo = first `halo` columns of the next slab (clamped at end)
                pl.BlockSpec((cin, halo),
                             lambda i: (0, jnp.minimum((i + 1) * ratio,
                                                       last_halo))),
                # per-tap folded weights (resident)
                pl.BlockSpec((n_taps, cout, cin), lambda i: (0, 0, 0)),
                # folded BN bias (resident)
                pl.BlockSpec((cout, 1), lambda i: (0, 0)),
            ],
            out_specs=pl.BlockSpec((cout, tile_m), lambda i: (0, i)),
        ),
        compiler_params=pltpu.CompilerParams(
            dimension_semantics=("parallel",)),
    )(x2p, x2p, w_taps.astype(jnp.float32),
      bias.reshape(cout, 1).astype(jnp.float32))
    return out[:, :p_valid]


# ------------------------------- SepConv3d -------------------------------- #
def _bn_fold(gamma, beta, mean, var):
    scale = gamma / jnp.sqrt(var + EPS)
    bias = beta - mean * scale
    return scale, bias


@functools.partial(jax.jit,
                   static_argnames=("kernel_size", "stride", "padding",
                                    "tile_m"))
def sep_conv3d(x, params, *, kernel_size, stride, padding, tile_m=512):
    """x: (N, Cin, T, H, W) float32 (NCDHW, same as PyTorch)."""
    k, s, p = kernel_size, stride, padding
    N, Cin, T, H, W = x.shape
    Cout = params["w_s"].shape[0]
    Hp, Wp = H + 2 * p, W + 2 * p
    Ho = (Hp - k) // s + 1
    Wo = (Wp - k) // s + 1
    Tp = T + 2 * p
    To = (Tp - k) // s + 1

    # ---- spatial conv (1,k,k), stride (1,s,s), pad (0,p,p) + BN + ReLU ----
    xp = jnp.pad(x, ((0, 0), (0, 0), (0, 0), (p, p), (p, p)))     # (N,Cin,T,Hp,Wp)
    x2 = jnp.transpose(xp, (1, 0, 2, 3, 4)).reshape(Cin, N * T * Hp * Wp)
    scale_s, bias_s = _bn_fold(params["gamma_s"], params["beta_s"],
                               params["mean_s"], params["var_s"])
    # fold BN scale into the weights: (x*w)*s == x*(w*s)
    w_s = params["w_s"][:, :, 0] * scale_s[:, None, None, None]   # (Cout,Cin,k,k)
    w_s_taps = jnp.transpose(w_s, (2, 3, 0, 1)).reshape(k * k, Cout, Cin)
    off_s = tuple(kh * Wp + kw for kh in range(k) for kw in range(k))
    y = shifted_tap_conv_bn_relu(x2, w_s_taps, bias_s, off_s, tile_m=tile_m)
    y = y.reshape(Cout, N, T, Hp, Wp)
    # extract the (stride-s) valid output positions of the padded grid
    y = y[:, :, :, 0:(Ho - 1) * s + 1:s, 0:(Wo - 1) * s + 1:s]    # (Cout,N,T,Ho,Wo)

    # ---- temporal conv (k,1,1), stride (s,1,1), pad (p,0,0) + BN + ReLU ----
    yp = jnp.pad(y, ((0, 0), (0, 0), (p, p), (0, 0), (0, 0)))     # (Cout,N,Tp,Ho,Wo)
    y2 = yp.reshape(Cout, N * Tp * Ho * Wo)
    scale_t, bias_t = _bn_fold(params["gamma_t"], params["beta_t"],
                               params["mean_t"], params["var_t"])
    w_t = params["w_t"][:, :, :, 0, 0] * scale_t[:, None, None]   # (Cout,Cout,k)
    w_t_taps = jnp.transpose(w_t, (2, 0, 1))                      # (k,Cout,Cout)
    off_t = tuple(kt * Ho * Wo for kt in range(k))
    z = shifted_tap_conv_bn_relu(y2, w_t_taps, bias_t, off_t, tile_m=tile_m)
    z = z.reshape(Cout, N, Tp, Ho, Wo)
    z = z[:, :, 0:(To - 1) * s + 1:s, :, :]                       # (Cout,N,To,Ho,Wo)
    return jnp.transpose(z, (1, 0, 2, 3, 4))                      # NCDHW


# ------------------------ pure-JAX reference check ------------------------ #
def sep_conv3d_reference(x, params, *, kernel_size, stride, padding):
    k, s, p = kernel_size, stride, padding

    def bn_relu(y, gamma, beta, mean, var):
        scale = gamma / jnp.sqrt(var + EPS)
        bias = beta - mean * scale
        y = y * scale[None, :, None, None, None] + bias[None, :, None, None, None]
        return jnp.maximum(y, 0.0)

    y = jax.lax.conv_general_dilated(
        x, params["w_s"], window_strides=(1, s, s),
        padding=((0, 0), (p, p), (p, p)),
        dimension_numbers=("NCDHW", "OIDHW", "NCDHW"))
    y = bn_relu(y, params["gamma_s"], params["beta_s"],
                params["mean_s"], params["var_s"])
    z = jax.lax.conv_general_dilated(
        y, params["w_t"], window_strides=(s, 1, 1),
        padding=((p, p), (0, 0), (0, 0)),
        dimension_numbers=("NCDHW", "OIDHW", "NCDHW"))
    z = bn_relu(z, params["gamma_t"], params["beta_t"],
                params["mean_t"], params["var_t"])
    return z


# ---------------------------------- main ----------------------------------- #
if __name__ == "__main__":
    N, Cin, Cout, T, H, W = 2, 4, 8, 8, 16, 16
    k, s, p = 3, 1, 1

    keys = jax.random.split(jax.random.PRNGKey(0), 11)
    params = {
        "w_s":     jax.random.normal(keys[0], (Cout, Cin, 1, k, k), jnp.float32) * 0.1,
        "gamma_s": 1.0 + 0.1 * jax.random.normal(keys[1], (Cout,), jnp.float32),
        "beta_s":  0.1 * jax.random.normal(keys[2], (Cout,), jnp.float32),
        "mean_s":  0.1 * jax.random.normal(keys[3], (Cout,), jnp.float32),
        "var_s":   jax.random.uniform(keys[4], (Cout,), jnp.float32, minval=0.5, maxval=1.5),
        "w_t":     jax.random.normal(keys[5], (Cout, Cout, k, 1, 1), jnp.float32) * 0.1,
        "gamma_t": 1.0 + 0.1 * jax.random.normal(keys[6], (Cout,), jnp.float32),
        "beta_t":  0.1 * jax.random.normal(keys[7], (Cout,), jnp.float32),
        "mean_t":  0.1 * jax.random.normal(keys[8], (Cout,), jnp.float32),
        "var_t":   jax.random.uniform(keys[9], (Cout,), jnp.float32, minval=0.5, maxval=1.5),
    }
    x = jax.random.normal(keys[10], (N, Cin, T, H, W), jnp.float32)

    out = sep_conv3d(x, params, kernel_size=k, stride=s, padding=p)
    out = jax.block_until_ready(out)

    ref = sep_conv3d_reference(x, params, kernel_size=k, stride=s, padding=p)
    ref = jax.block_until_ready(ref)

    assert out.shape == ref.shape == (N, Cout, T, H, W), (out.shape, ref.shape)
    assert jnp.allclose(out, ref, atol=1e-4, rtol=1e-4), float(
        jnp.max(jnp.abs(out - ref)))
    print("KERNEL_OK")
</pallas_src>

<mosaic_0001>
module attributes {stable_mosaic.version = 11 : i64} {
  func.func @_shifted_tap_conv_kernel(%arg0: i32, %arg1: memref<4x512xf32, #tpu.memory_space<vmem>>, %arg2: memref<4x128xf32, #tpu.memory_space<vmem>>, %arg3: memref<9x8x4xf32, #tpu.memory_space<vmem>>, %arg4: memref<8x1xf32, #tpu.memory_space<vmem>>, %arg5: memref<8x512xf32, #tpu.memory_space<vmem>>) attributes {dimension_semantics = [#tpu.dimension_semantics<parallel>], iteration_bounds = array<i64: 11>, scalar_prefetch = 0 : i64, scratch_operands = 0 : i64, tpu.core_type = #tpu.core_type<tc>, window_params = [{transform_indices = @transform_0, window_bounds = array<i64: 4, 512>}, {transform_indices = @transform_1, window_bounds = array<i64: 4, 128>}, {pipeline_mode = #tpu.pipeline_mode<synchronous>, transform_indices = @transform_2, window_bounds = array<i64: 9, 8, 4>}, {pipeline_mode = #tpu.pipeline_mode<synchronous>, transform_indices = @transform_3, window_bounds = array<i64: 8, 1>}, {transform_indices = @transform_4, window_bounds = array<i64: 8, 512>}]} {
    %c0 = arith.constant 0 : index
    %c0_0 = arith.constant 0 : index
    %0 = vector.load %arg1[%c0, %c0_0] : memref<4x512xf32, #tpu.memory_space<vmem>>, vector<4x512xf32>
    %c0_1 = arith.constant 0 : index
    %c0_2 = arith.constant 0 : index
    %1 = vector.load %arg2[%c0_1, %c0_2] : memref<4x128xf32, #tpu.memory_space<vmem>>, vector<4x128xf32>
    %2 = tpu.concatenate %0, %1 in 1 : vector<4x512xf32>, vector<4x128xf32> -> vector<4x640xf32>
    %cst = arith.constant 0.000000e+00 : f32
    %3 = vector.broadcast %cst : f32 to vector<8x512xf32>
    %4 = vector.extract_strided_slice %2 {offsets = [0, 0], sizes = [4, 512], strides = [1, 1]} : vector<4x640xf32> to vector<4x512xf32>
    %c0_3 = arith.constant 0 : index
    %c0_4 = arith.constant 0 : index
    %c0_5 = arith.constant 0 : index
    %5 = vector.load %arg3[%c0_3, %c0_4, %c0_5] : memref<9x8x4xf32, #tpu.memory_space<vmem>>, vector<1x8x4xf32>
    %6 = vector.shape_cast %5 : vector<1x8x4xf32> to vector<8x4xf32>
    %cst_6 = arith.constant dense<0.000000e+00> : vector<8x512xf32>
    %7 = tpu.matmul %6, %4, %cst_6 {dimension_numbers = #tpu.dot_dimension_numbers<[1], [0], [0], [1], [0, 0, 1, 1], [], []>} : vector<8x4xf32>, vector<4x512xf32>, vector<8x512xf32> -> vector<8x512xf32>
    %8 = arith.addf %3, %7 : vector<8x512xf32>
    %9 = vector.extract_strided_slice %2 {offsets = [0, 1], sizes = [4, 512], strides = [1, 1]} : vector<4x640xf32> to vector<4x512xf32>
    %c1 = arith.constant 1 : index
    %c0_7 = arith.constant 0 : index
    %c0_8 = arith.constant 0 : index
    %10 = vector.load %arg3[%c1, %c0_7, %c0_8] : memref<9x8x4xf32, #tpu.memory_space<vmem>>, vector<1x8x4xf32>
    %11 = vector.shape_cast %10 : vector<1x8x4xf32> to vector<8x4xf32>
    %cst_9 = arith.constant dense<0.000000e+00> : vector<8x512xf32>
    %12 = tpu.matmul %11, %9, %cst_9 {dimension_numbers = #tpu.dot_dimension_numbers<[1], [0], [0], [1], [0, 0, 1, 1], [], []>} : vector<8x4xf32>, vector<4x512xf32>, vector<8x512xf32> -> vector<8x512xf32>
    %13 = arith.addf %8, %12 : vector<8x512xf32>
    %14 = vector.extract_strided_slice %2 {offsets = [0, 2], sizes = [4, 512], strides = [1, 1]} : vector<4x640xf32> to vector<4x512xf32>
    %c2 = arith.constant 2 : index
    %c0_10 = arith.constant 0 : index
    %c0_11 = arith.constant 0 : index
    %15 = vector.load %arg3[%c2, %c0_10, %c0_11] : memref<9x8x4xf32, #tpu.memory_space<vmem>>, vector<1x8x4xf32>
    %16 = vector.shape_cast %15 : vector<1x8x4xf32> to vector<8x4xf32>
    %cst_12 = arith.constant dense<0.000000e+00> : vector<8x512xf32>
    %17 = tpu.matmul %16, %14, %cst_12 {dimension_numbers = #tpu.dot_dimension_numbers<[1], [0], [0], [1], [0, 0, 1, 1], [], []>} : vector<8x4xf32>, vector<4x512xf32>, vector<8x512xf32> -> vector<8x512xf32>
    %18 = arith.addf %13, %17 : vector<8x512xf32>
    %19 = vector.extract_strided_slice %2 {offsets = [0, 18], sizes = [4, 512], strides = [1, 1]} : vector<4x640xf32> to vector<4x512xf32>
    %c3 = arith.constant 3 : index
    %c0_13 = arith.constant 0 : index
    %c0_14 = arith.constant 0 : index
    %20 = vector.load %arg3[%c3, %c0_13, %c0_14] : memref<9x8x4xf32, #tpu.memory_space<vmem>>, vector<1x8x4xf32>
    %21 = vector.shape_cast %20 : vector<1x8x4xf32> to vector<8x4xf32>
    %cst_15 = arith.constant dense<0.000000e+00> : vector<8x512xf32>
    %22 = tpu.matmul %21, %19, %cst_15 {dimension_numbers = #tpu.dot_dimension_numbers<[1], [0], [0], [1], [0, 0, 1, 1], [], []>} : vector<8x4xf32>, vector<4x512xf32>, vector<8x512xf32> -> vector<8x512xf32>
    %23 = arith.addf %18, %22 : vector<8x512xf32>
    %24 = vector.extract_strided_slice %2 {offsets = [0, 19], sizes = [4, 512], strides = [1, 1]} : vector<4x640xf32> to vector<4x512xf32>
    %c4 = arith.constant 4 : index
    %c0_16 = arith.constant 0 : index
    %c0_17 = arith.constant 0 : index
    %25 = vector.load %arg3[%c4, %c0_16, %c0_17] : memref<9x8x4xf32, #tpu.memory_space<vmem>>, vector<1x8x4xf32>
    %26 = vector.shape_cast %25 : vector<1x8x4xf32> to vector<8x4xf32>
    %cst_18 = arith.constant dense<0.000000e+00> : vector<8x512xf32>
    %27 = tpu.matmul %26, %24, %cst_18 {dimension_numbers = #tpu.dot_dimension_numbers<[1], [0], [0], [1], [0, 0, 1, 1], [], []>} : vector<8x4xf32>, vector<4x512xf32>, vector<8x512xf32> -> vector<8x512xf32>
    %28 = arith.addf %23, %27 : vector<8x512xf32>
    %29 = vector.extract_strided_slice %2 {offsets = [0, 20], sizes = [4, 512], strides = [1, 1]} : vector<4x640xf32> to vector<4x512xf32>
    %c5 = arith.constant 5 : index
    %c0_19 = arith.constant 0 : index
    %c0_20 = arith.constant 0 : index
    %30 = vector.load %arg3[%c5, %c0_19, %c0_20] : memref<9x8x4xf32, #tpu.memory_space<vmem>>, vector<1x8x4xf32>
    %31 = vector.shape_cast %30 : vector<1x8x4xf32> to vector<8x4xf32>
    %cst_21 = arith.constant dense<0.000000e+00> : vector<8x512xf32>
    %32 = tpu.matmul %31, %29, %cst_21 {dimension_numbers = #tpu.dot_dimension_numbers<[1], [0], [0], [1], [0, 0, 1, 1], [], []>} : vector<8x4xf32>, vector<4x512xf32>, vector<8x512xf32> -> vector<8x512xf32>
    %33 = arith.addf %28, %32 : vector<8x512xf32>
    %34 = vector.extract_strided_slice %2 {offsets = [0, 36], sizes = [4, 512], strides = [1, 1]} : vector<4x640xf32> to vector<4x512xf32>
    %c6 = arith.constant 6 : index
    %c0_22 = arith.constant 0 : index
    %c0_23 = arith.constant 0 : index
    %35 = vector.load %arg3[%c6, %c0_22, %c0_23] : memref<9x8x4xf32, #tpu.memory_space<vmem>>, vector<1x8x4xf32>
    %36 = vector.shape_cast %35 : vector<1x8x4xf32> to vector<8x4xf32>
    %cst_24 = arith.constant dense<0.000000e+00> : vector<8x512xf32>
    %37 = tpu.matmul %36, %34, %cst_24 {dimension_numbers = #tpu.dot_dimension_numbers<[1], [0], [0], [1], [0, 0, 1, 1], [], []>} : vector<8x4xf32>, vector<4x512xf32>, vector<8x512xf32> -> vector<8x512xf32>
    %38 = arith.addf %33, %37 : vector<8x512xf32>
    %39 = vector.extract_strided_slice %2 {offsets = [0, 37], sizes = [4, 512], strides = [1, 1]} : vector<4x640xf32> to vector<4x512xf32>
    %c7 = arith.constant 7 : index
    %c0_25 = arith.constant 0 : index
    %c0_26 = arith.constant 0 : index
    %40 = vector.load %arg3[%c7, %c0_25, %c0_26] : memref<9x8x4xf32, #tpu.memory_space<vmem>>, vector<1x8x4xf32>
    %41 = vector.shape_cast %40 : vector<1x8x4xf32> to vector<8x4xf32>
    %cst_27 = arith.constant dense<0.000000e+00> : vector<8x512xf32>
    %42 = tpu.matmul %41, %39, %cst_27 {dimension_numbers = #tpu.dot_dimension_numbers<[1], [0], [0], [1], [0, 0, 1, 1], [], []>} : vector<8x4xf32>, vector<4x512xf32>, vector<8x512xf32> -> vector<8x512xf32>
    %43 = arith.addf %38, %42 : vector<8x512xf32>
    %44 = vector.extract_strided_slice %2 {offsets = [0, 38], sizes = [4, 512], strides = [1, 1]} : vector<4x640xf32> to vector<4x512xf32>
    %c8 = arith.constant 8 : index
    %c0_28 = arith.constant 0 : index
    %c0_29 = arith.constant 0 : index
    %45 = vector.load %arg3[%c8, %c0_28, %c0_29] : memref<9x8x4xf32, #tpu.memory_space<vmem>>, vector<1x8x4xf32>
    %46 = vector.shape_cast %45 : vector<1x8x4xf32> to vector<8x4xf32>
    %cst_30 = arith.constant dense<0.000000e+00> : vector<8x512xf32>
    %47 = tpu.matmul %46, %44, %cst_30 {dimension_numbers = #tpu.dot_dimension_numbers<[1], [0], [0], [1], [0, 0, 1, 1], [], []>} : vector<8x4xf32>, vector<4x512xf32>, vector<8x512xf32> -> vector<8x512xf32>
    %48 = arith.addf %43, %47 : vector<8x512xf32>
    %c0_31 = arith.constant 0 : index
    %c0_32 = arith.constant 0 : index
    %49 = vector.load %arg4[%c0_31, %c0_32] : memref<8x1xf32, #tpu.memory_space<vmem>>, vector<8x1xf32>
    %50 = vector.broadcast %49 : vector<8x1xf32> to vector<8x512xf32>
    %51 = arith.addf %48, %50 : vector<8x512xf32>
    %cst_33 = arith.constant 0.000000e+00 : f32
    %52 = vector.broadcast %cst_33 : f32 to vector<8x512xf32>
    %53 = arith.maximumf %51, %52 : vector<8x512xf32>
    %c0_34 = arith.constant 0 : index
    %c0_35 = arith.constant 0 : index
    %54 = vector.load %arg5[%c0_34, %c0_35] : memref<8x512xf32, #tpu.memory_space<vmem>>, vector<8x512xf32>
    tpu.vector_store %arg5[%c0_34, %c0_35], %53 {strides = array<i32>} : memref<8x512xf32, #tpu.memory_space<vmem>>, vector<8x512xf32>,
    return
  }
  func.func @transform_0(%arg0: i32) -> (i32, i32) {
    %c0_i32 = arith.constant 0 : i32
    %c0_i32_0 = arith.constant 0 : i32
    return %c0_i32, %arg0 : i32, i32
  }
  func.func @transform_1(%arg0: i32) -> (i32, i32) {
    %c1_i32 = arith.constant 1 : i32
    %0 = arith.addi %arg0, %c1_i32 : i32
    %c4_i32 = arith.constant 4 : i32
    %1 = arith.muli %0, %c4_i32 : i32
    %c43_i32 = arith.constant 43 : i32
    %2 = arith.minsi %1, %c43_i32 : i32
    %c0_i32 = arith.constant 0 : i32
    %c0_i32_0 = arith.constant 0 : i32
    return %c0_i32, %2 : i32, i32
  }
  func.func @transform_2(%arg0: i32) -> (i32, i32, i32) {
    %c0_i32 = arith.constant 0 : i32
    %c0_i32_0 = arith.constant 0 : i32
    %c0_i32_1 = arith.constant 0 : i32
    %c0_i32_2 = arith.constant 0 : i32
    return %c0_i32, %c0_i32_0, %c0_i32_1 : i32, i32, i32
  }
  func.func @transform_3(%arg0: i32) -> (i32, i32) {
    %c0_i32 = arith.constant 0 : i32
    %c0_i32_0 = arith.constant 0 : i32
    %c0_i32_1 = arith.constant 0 : i32
    return %c0_i32, %c0_i32_0 : i32, i32
  }
  func.func @transform_4(%arg0: i32) -> (i32, i32) {
    %c0_i32 = arith.constant 0 : i32
    %c0_i32_0 = arith.constant 0 : i32
    return %c0_i32, %arg0 : i32, i32
  }
}

module attributes {stable_mosaic.version = 11 : i64} {
  func.func @_shifted_tap_conv_kernel(%arg0: i32, %arg1: memref<8x512xf32, #tpu.memory_space<vmem>>, %arg2: memref<8x512xf32, #tpu.memory_space<vmem>>, %arg3: memref<3x8x8xf32, #tpu.memory_space<vmem>>, %arg4: memref<8x1xf32, #tpu.memory_space<vmem>>, %arg5: memref<8x512xf32, #tpu.memory_space<vmem>>) attributes {dimension_semantics = [#tpu.dimension_semantics<parallel>], iteration_bounds = array<i64: 11>, scalar_prefetch = 0 : i64, scratch_operands = 0 : i64, tpu.core_type = #tpu.core_type<tc>, window_params = [{transform_indices = @transform_0, window_bounds = array<i64: 8, 512>}, {transform_indices = @transform_1, window_bounds = array<i64: 8, 512>}, {pipeline_mode = #tpu.pipeline_mode<synchronous>, transform_indices = @transform_2, window_bounds = array<i64: 3, 8, 8>}, {pipeline_mode = #tpu.pipeline_mode<synchronous>, transform_indices = @transform_3, window_bounds = array<i64: 8, 1>}, {transform_indices = @transform_4, window_bounds = array<i64: 8, 512>}]} {
    %c0 = arith.constant 0 : index
    %c0_0 = arith.constant 0 : index
    %0 = vector.load %arg1[%c0, %c0_0] : memref<8x512xf32, #tpu.memory_space<vmem>>, vector<8x512xf32>
    %c0_1 = arith.constant 0 : index
    %c0_2 = arith.constant 0 : index
    %1 = vector.load %arg2[%c0_1, %c0_2] : memref<8x512xf32, #tpu.memory_space<vmem>>, vector<8x512xf32>
    %2 = tpu.concatenate %0, %1 in 1 : vector<8x512xf32>, vector<8x512xf32> -> vector<8x1024xf32>
    %cst = arith.constant 0.000000e+00 : f32
    %3 = vector.broadcast %cst : f32 to vector<8x512xf32>
    %4 = vector.extract_strided_slice %2 {offsets = [0, 0], sizes = [8, 512], strides = [1, 1]} : vector<8x1024xf32> to vector<8x512xf32>
    %c0_3 = arith.constant 0 : index
    %c0_4 = arith.constant 0 : index
    %c0_5 = arith.constant 0 : index
    %5 = vector.load %arg3[%c0_3, %c0_4, %c0_5] : memref<3x8x8xf32, #tpu.memory_space<vmem>>, vector<1x8x8xf32>
    %6 = vector.shape_cast %5 : vector<1x8x8xf32> to vector<8x8xf32>
    %cst_6 = arith.constant dense<0.000000e+00> : vector<8x512xf32>
    %7 = tpu.matmul %6, %4, %cst_6 {dimension_numbers = #tpu.dot_dimension_numbers<[1], [0], [0], [1], [0, 0, 1, 1], [], []>} : vector<8x8xf32>, vector<8x512xf32>, vector<8x512xf32> -> vector<8x512xf32>
    %8 = arith.addf %3, %7 : vector<8x512xf32>
    %9 = vector.extract_strided_slice %2 {offsets = [0, 256], sizes = [8, 512], strides = [1, 1]} : vector<8x1024xf32> to vector<8x512xf32>
    %c1 = arith.constant 1 : index
    %c0_7 = arith.constant 0 : index
    %c0_8 = arith.constant 0 : index
    %10 = vector.load %arg3[%c1, %c0_7, %c0_8] : memref<3x8x8xf32, #tpu.memory_space<vmem>>, vector<1x8x8xf32>
    %11 = vector.shape_cast %10 : vector<1x8x8xf32> to vector<8x8xf32>
    %cst_9 = arith.constant dense<0.000000e+00> : vector<8x512xf32>
    %12 = tpu.matmul %11, %9, %cst_9 {dimension_numbers = #tpu.dot_dimension_numbers<[1], [0], [0], [1], [0, 0, 1, 1], [], []>} : vector<8x8xf32>, vector<8x512xf32>, vector<8x512xf32> -> vector<8x512xf32>
    %13 = arith.addf %8, %12 : vector<8x512xf32>
    %14 = vector.extract_strided_slice %2 {offsets = [0, 512], sizes = [8, 512], strides = [1, 1]} : vector<8x1024xf32> to vector<8x512xf32>
    %c2 = arith.constant 2 : index
    %c0_10 = arith.constant 0 : index
    %c0_11 = arith.constant 0 : index
    %15 = vector.load %arg3[%c2, %c0_10, %c0_11] : memref<3x8x8xf32, #tpu.memory_space<vmem>>, vector<1x8x8xf32>
    %16 = vector.shape_cast %15 : vector<1x8x8xf32> to vector<8x8xf32>
    %cst_12 = arith.constant dense<0.000000e+00> : vector<8x512xf32>
    %17 = tpu.matmul %16, %14, %cst_12 {dimension_numbers = #tpu.dot_dimension_numbers<[1], [0], [0], [1], [0, 0, 1, 1], [], []>} : vector<8x8xf32>, vector<8x512xf32>, vector<8x512xf32> -> vector<8x512xf32>
    %18 = arith.addf %13, %17 : vector<8x512xf32>
    %c0_13 = arith.constant 0 : index
    %c0_14 = arith.constant 0 : index
    %19 = vector.load %arg4[%c0_13, %c0_14] : memref<8x1xf32, #tpu.memory_space<vmem>>, vector<8x1xf32>
    %20 = vector.broadcast %19 : vector<8x1xf32> to vector<8x512xf32>
    %21 = arith.addf %18, %20 : vector<8x512xf32>
    %cst_15 = arith.constant 0.000000e+00 : f32
    %22 = vector.broadcast %cst_15 : f32 to vector<8x512xf32>
    %23 = arith.maximumf %21, %22 : vector<8x512xf32>
    %c0_16 = arith.constant 0 : index
    %c0_17 = arith.constant 0 : index
    %24 = vector.load %arg5[%c0_16, %c0_17] : memref<8x512xf32, #tpu.memory_space<vmem>>, vector<8x512xf32>
    tpu.vector_store %arg5[%c0_16, %c0_17], %23 {strides = array<i32>} : memref<8x512xf32, #tpu.memory_space<vmem>>, vector<8x512xf32>,
    return
  }
  func.func @transform_0(%arg0: i32) -> (i32, i32) {
    %c0_i32 = arith.constant 0 : i32
    %c0_i32_0 = arith.constant 0 : i32
    return %c0_i32, %arg0 : i32, i32
  }
  func.func @transform_1(%arg0: i32) -> (i32, i32) {
    %c1_i32 = arith.constant 1 : i32
    %0 = arith.addi %arg0, %c1_i32 : i32
    %c1_i32_0 = arith.constant 1 : i32
    %1 = arith.muli %0, %c1_i32_0 : i32
    %c10_i32 = arith.constant 10 : i32
    %2 = arith.minsi %1, %c10_i32 : i32
    %c0_i32 = arith.constant 0 : i32
    %c0_i32_1 = arith.constant 0 : i32
    return %c0_i32, %2 : i32, i32
  }
  func.func @transform_2(%arg0: i32) -> (i32, i32, i32) {
    %c0_i32 = arith.constant 0 : i32
    %c0_i32_0 = arith.constant 0 : i32
    %c0_i32_1 = arith.constant 0 : i32
    %c0_i32_2 = arith.constant 0 : i32
    return %c0_i32, %c0_i32_0, %c0_i32_1 : i32, i32, i32
  }
  func.func @transform_3(%arg0: i32) -> (i32, i32) {
    %c0_i32 = arith.constant 0 : i32
    %c0_i32_0 = arith.constant 0 : i32
    %c0_i32_1 = arith.constant 0 : i32
    return %c0_i32, %c0_i32_0 : i32, i32
  }
  func.func @transform_4(%arg0: i32) -> (i32, i32) {
    %c0_i32 = arith.constant 0 : i32
    %c0_i32_0 = arith.constant 0 : i32
    return %c0_i32, %arg0 : i32, i32
  }
}

</mosaic_0001>

<bundles_post_ra>
// kernel: sep_conv3d.2
= control target key start
LH: loop header
LB: loop body
LE: loop exit
PB: predicated region body
PF: predicated region fallthrough
CT: control target
= control target key end

     0   :  { %s1496_s15 = smov 0   ;;  %s1694_s0 = inlined_call_operand.vmem [shape: f32[4,5632], index: 0, kind: input, shape index: {}, may-alias: {0,1}]   ;;  %s1695_s1 = inlined_call_operand.vmem [shape: f32[4,5632], index: 1, kind: input, shape index: {}, may-alias: {0,1}]   ;;  %s1696_s2 = inlined_call_operand.vmem [shape: f32[9,8,4], index: 2, kind: input, shape index: {}]   ;;  %s1697_s3 = inlined_call_operand.vmem [shape: f32[8,1], index: 3, kind: input, shape index: {}]   ;;  %s1698_s4 = inlined_call_operand.vmem [shape: f32[8,5632], index: 4, kind: output, shape index: {}]  }
   0x1 LB: > { %s1331_s16 = sadd.s32 4294967295, %s1460_s15   ;;  %p1337_p0 = scmp.ge.s32.totalorder %s1460_s15, 1  ;;  %s1460_s15 = sphi %s1496_s15, %s14_s15  }
   0x2   : > { %p188_p1 = scmp.lt.s32.totalorder %s1460_s15, 12 }
   0x4   : > { %p189_p2 = pnand %p1337_p0, %p188_p1 }
   0x5   : > { %s1338_s17 = sshll.u32 (!%p189_p2), %s1331_s16, 2  ;;  %s1462_s27 = smov (!%p189_p2), 127  }
   0x6   : > { %192 = sbr.rel (%p189_p2) target bundleno = 379 (0x17b), region = 36  ;;  %s1434_s18 = sadd.s32 (!%p189_p2), 4, %s1338_s17 }
   0x7   : > { %p223_p3 = scmp.lt.s32.totalorder (!%p189_p2), %s1338_s17, 43  ;;  %p230_p4 = scmp.lt.s32.totalorder (!%p189_p2), %s1434_s18, 43 }
   0x8   : > { %s1463_s28 = smov (!%p189_p2), 126   ;;  %s1464_s29 = smov (!%p189_p2), 110  }
   0x9   : > { %s1465_s30 = smov (!%p189_p2), 109   ;;  %s1466_s5 = smov (!%p189_p2), 108  }
   0xa   : > { %s1467_s6 = smov (!%p189_p2), 92   ;;  %s1468_s7 = smov (!%p189_p2), 91  }
   0xb   : > { %s1700_s17 = smov (!%p223_p3, %s1338_s17), 43  ;;  %s1702_s18 = smov (!%p230_p4, %s1434_s18), 43  ;;  %vm272_vm0 = vcmask 1039360   ;;  %vm281_vm1 = vcmask 1043456   ;;  %v1347_v14 = vld [vmem:[%s1696_s2 + $0x8] sm:$0xff]  ;;  %vm277_vm2 = vcmask 31744  }
   0xc   : > { %s1339_s19 = sshll.u32 %s1700_s17, 2  ;;  %s1704_s18 = smov (!%p230_p4, %s1702_s18), 43  ;;  %v258_v22 = vld [vmem:[%s1696_s2] sm:$0xff]  ;;  %vm473_vm3 = vcmask 1031168   ;;  %vm585_vm4 = vcmask 900096   ;;  %v1364_v34 = vld [vmem:[%s1696_s2 + $0x10] sm:$0xff] }
   0xd   : > { %s226_s22 = scalar_lea.vmem %s1694_s0, %s1339_s19  ;;  %s1344_s23 = sshll.u32 %s1704_s18, 2  ;;  %vm697_vm5 = vcmask 891904   ;;  %v1373_v40 = vld [vmem:[%s1696_s2 + $0x18] sm:$0xff]  ;;  %v1382_v45 = vld [vmem:[%s1696_s2 + $0x20] sm:$0xff]  ;;  %vm809_vm6 = vcmask 883712   ;;  %vm921_vm7 = vcmask 752640  }
   0xe   : > { %v246_v0 = vld [vmem:[%s226_s22] sm:$0xff]  ;;  %v247_v1 = vld [vmem:[%s226_s22 + $0x8] sm:$0xff]  ;;  %s235_s26 = scalar_lea.vmem %s1695_s1, %s1344_s23  ;;  %s1469_s8 = smov 90   ;;  %v1400_v63 = vld [vmem:[%s1696_s2 + $0x30] sm:$0xff]  ;;  %vm1033_vm8 = vcmask 744448   ;;  %vm1145_vm9 = vcmask 736256  }
   0xf   : > { %251 = vst [vmem:[#allocation1] ss:$2 sm:$0xff] %v246_v0  ;;  %v248_v2 = vld [vmem:[%s235_s26] sm:$0xf]  ;;  %v1391_v53 = vld [vmem:[%s1696_s2 + $0x28] sm:$0xff] }
  0x10   : > { %253 = vst [vmem:[#allocation1 + $0x10] ss:$2 sm:$0xff] %v247_v1  ;;  %270 = vrot.lane.b32.xlu1 %v248_v2, %s1462_s27 }
  0x16   : > { %v1513_v3 = vld.sshfl [vmem:[#allocation1 + $0x8] sm:$0xff pattern:$0x75316420]  ;;  %v1521_v6 = vld.sshfl [vmem:[#allocation1] sm:$0xff pattern:$0x75316420] }
  0x17   : > { %v1515_v4 = vld.sshfl [vmem:[#allocation1 + $0x10] sm:$0xff pattern:$0x75316420]  ;;  %264 = vrot.lane.b32.xlu2 %v1513_v3, %s1462_s27  ;;  %v1519_v5 = vld.sshfl [vmem:[#allocation1 + $0x18] sm:$0xff pattern:$0x75316420] }
  0x18   : > { %266 = vrot.lane.b32.xlu0 %v1515_v4, %s1462_s27  ;;  %471 = vrot.lane.b32.xlu1 %v248_v2, %s1463_s28 }
  0x1f   : > { %467 = vrot.lane.b32.xlu2 %v1515_v4, %s1463_s28 }
  0x20   : > { %268 = vrot.lane.b32.xlu0 %v1519_v5, %s1462_s27  ;;  %262 = vrot.lane.b32.xlu1 %v1521_v6, %s1462_s27 }
  0x27   : > { %463 = vrot.lane.b32.xlu2 %v1521_v6, %s1463_s28 }
  0x28   : > { %469 = vrot.lane.b32.xlu0 %v1519_v5, %s1463_s28  ;;  %579 = vrot.lane.b32.xlu1 %v1515_v4, %s1464_s29 }
  0x2f   : > { %581 = vrot.lane.b32.xlu2 %v1519_v5, %s1464_s29 }
  0x30   : > { %465 = vrot.lane.b32.xlu0 %v1513_v3, %s1463_s28  ;;  %575 = vrot.lane.b32.xlu1 %v1521_v6, %s1464_s29 }
  0x37   : > { %577 = vrot.lane.b32.xlu2 %v1513_v3, %s1464_s29 }
  0x38   : > { %583 = vrot.lane.b32.xlu0 %v248_v2, %s1464_s29  ;;  %693 = vrot.lane.b32.xlu1 %v1519_v5, %s1465_s30 }
  0x3f   : > { %695 = vrot.lane.b32.xlu2 %v248_v2, %s1465_s30 }
  0x40   : > { %691 = vrot.lane.b32.xlu0 %v1515_v4, %s1465_s30  ;;  %689 = vrot.lane.b32.xlu1 %v1513_v3, %s1465_s30 }
  0x47   : > { %803 = vrot.lane.b32.xlu2 %v1515_v4, %s1466_s5 }
  0x48   : > { %687 = vrot.lane.b32.xlu0 %v1521_v6, %s1465_s30  ;;  %807 = vrot.lane.b32.xlu1 %v248_v2, %s1466_s5 }
  0x4f   : > { %799 = vrot.lane.b32.xlu2 %v1521_v6, %s1466_s5 }
  0x50   : > { %805 = vrot.lane.b32.xlu0 %v1519_v5, %s1466_s5  ;;  %915 = vrot.lane.b32.xlu1 %v1515_v4, %s1467_s6 }
  0x57   : > { %917 = vrot.lane.b32.xlu2 %v1519_v5, %s1467_s6 }
  0x58   : > { %801 = vrot.lane.b32.xlu0 %v1513_v3, %s1466_s5  ;;  %911 = vrot.lane.b32.xlu1 %v1521_v6, %s1467_s6  ;;  %s1346_s5 = sshll.u32 %s1700_s17, 3 }
  0x5f   : > { %913 = vrot.lane.b32.xlu2 %v1513_v3, %s1467_s6 }
  0x60   : > { %919 = vrot.lane.b32.xlu0 %v248_v2, %s1467_s6  ;;  %1029 = vrot.lane.b32.xlu1 %v1519_v5, %s1468_s7 }
  0x67   : > { %1031 = vrot.lane.b32.xlu2 %v248_v2, %s1468_s7 }
  0x68   : > { %1027 = vrot.lane.b32.xlu0 %v1515_v4, %s1468_s7  ;;  %1025 = vrot.lane.b32.xlu1 %v1513_v3, %s1468_s7 }
  0x6f   : > { %1139 = vrot.lane.b32.xlu2 %v1515_v4, %s1469_s8 }
  0x70   : > { %1023 = vrot.lane.b32.xlu0 %v1521_v6, %s1468_s7  ;;  %1143 = vrot.lane.b32.xlu1 %v248_v2, %s1469_s8 }
  0x71   : > { %v265_v7 = vpop.permute.xlu2 %264 }
  0x77   : > { %1135 = vrot.lane.b32.xlu2 %v1521_v6, %s1469_s8 }
  0x78   : > { %1141 = vrot.lane.b32.xlu0 %v1519_v5, %s1469_s8 }
  0x79   : > { %v468_v8 = vpop.permute.xlu2 %467 }
  0x80   : > { %1137 = vrot.lane.b32.xlu0 %v1513_v3, %s1469_s8  ;;  %s244_s8 = scalar_lea.vmem %s1698_s4, %s1346_s5 }
  0x81   : > { %v464_v9 = vpop.permute.xlu2 %463 }
  0x82   : > { %v271_v10 = vpop.permute.xlu1 %270 }
  0x89   : > { %v582_v15 = vpop.permute.xlu2 %581 }
  0x8a   : > { %v267_v11 = vpop.permute.xlu0 %266  ;;  %v472_v13 = vpop.permute.xlu1 %471 }
  0x8b   : > { %v274_v12 = vsel %vm272_vm0, %v265_v7, %v267_v11 }
  0x8c   : > { %1350 = vmatpush.msk.msra.mxu1 %vm281_vm1, %v274_v12 }
  0x8d   : > { %1351 = vmatmul.msk.f32.vlgmr.msra.gmra.mxu1 %vm277_vm2, %v1347_v14 }
  0x8e   : > { %1358 = vmatpush.msk.msrb.mxu1 %vm281_vm1, %v1513_v3 }
  0x91   : > { %v578_v21 = vpop.permute.xlu2 %577 }
  0x92   : > { %v269_v16 = vpop.permute.xlu0 %268  ;;  %v263_v19 = vpop.permute.xlu1 %262 }
  0x93   : > { %v275_v17 = vsel %vm272_vm0, %v267_v11, %v269_v16  ;;  %v276_v18 = vsel %vm272_vm0, %v269_v16, %v271_v10  ;;  %v273_v20 = vsel %vm272_vm0, %v263_v19, %v265_v7  ;;  %v1245_v7 = vld [vmem:[%s1697_s3] sm:$0xff]  ;;  %v1409_v10 = vld [vmem:[%s1696_s2 + $0x38] sm:$0xff] }
  0x94   : > { %1352 = vmatpush.msk.msra.mxu2 %vm281_vm1, %v275_v17  ;;  %1354 = vmatpush.msk.msra.mxu3 %vm281_vm1, %v276_v18  ;;  %v1418_v19 = vld [vmem:[%s1696_s2 + $0x40] sm:$0xff] }
  0x95   : > { %1348 = vmatpush.msk.msra.mxu0 %vm281_vm1, %v273_v20  ;;  %1353 = vmatmul.msk.f32.vlgmr.msra.gmra.mxu2 %vm277_vm2, %v1347_v14 }
  0x96   : > { %1360 = vmatpush.msk.msrb.mxu2 %vm281_vm1, %v1515_v4  ;;  %1362 = vmatpush.msk.msrb.mxu3 %vm281_vm1, %v1519_v5 }
  0x97   : > { %1355 = vmatmul.msk.f32.vlgmr.msra.gmra.mxu3 %vm277_vm2, %v1347_v14  ;;  %1349 = vmatmul.msk.f32.vlgmr.msra.gmra.mxu0 %vm277_vm2, %v1347_v14 }
  0x98   : > { %1356 = vmatpush.msk.msrb.mxu0 %vm281_vm1, %v1521_v6  ;;  %1359 = vmatmul.msk.f32.vlgmr.msrb.gmra.mxu1 %vm277_vm2, %v258_v22 }
  0x99   : > { %v696_v28 = vpop.permute.xlu2 %695 }
  0x9a   : > { %v470_v23 = vpop.permute.xlu0 %469  ;;  %v580_v26 = vpop.permute.xlu1 %579 }
  0x9b   : > { %v476_v24 = vsel %vm473_vm3, %v468_v8, %v470_v23  ;;  %v477_v25 = vsel %vm473_vm3, %v470_v23, %v472_v13  ;;  %v588_v27 = vsel %vm585_vm4, %v580_v26, %v582_v15  ;;  %v587_v30 = vsel %vm585_vm4, %v578_v21, %v580_v26 }
  0x9c   : > { %1369 = vmatpush.msk.msra.mxu2 %vm281_vm1, %v476_v24  ;;  %1371 = vmatpush.msk.msra.mxu3 %vm281_vm1, %v477_v25 }
  0x9d   : > { %1361 = vmatmul.msk.f32.vlgmr.msrb.gmra.mxu2 %vm277_vm2, %v258_v22 }
  0x9e   : > { %1378 = vmatpush.msk.msrb.mxu2 %vm281_vm1, %v588_v27 }
  0x9f   : > { %1363 = vmatmul.msk.f32.vlgmr.msrb.gmra.mxu3 %vm277_vm2, %v258_v22  ;;  %1357 = vmatmul.msk.f32.vlgmr.msrb.gmra.mxu0 %vm277_vm2, %v258_v22 }
  0xa1   : > { %v804_v37 = vpop.permute.xlu2 %803 }
  0xa2   : > { %v466_v29 = vpop.permute.xlu0 %465  ;;  %v576_v33 = vpop.permute.xlu1 %575 }
  0xa3   : > { %v474_v31 = vsel %vm473_vm3, %v464_v9, %v466_v29  ;;  %v475_v32 = vsel %vm473_vm3, %v466_v29, %v468_v8  ;;  %v586_v35 = vsel %vm585_vm4, %v576_v33, %v578_v21  ;;  %v1470_v8 = vmov 0  }
  0xa4   : > { %1367 = vmatpush.msk.msra.mxu1 %vm281_vm1, %v475_v32  ;;  %1365 = vmatpush.msk.msra.mxu0 %vm281_vm1, %v474_v31 }
  0xa5   : > { %1370 = vmatmul.msk.f32.vlgmr.msra.gmra.mxu2 %vm277_vm2, %v1364_v34  ;;  %1368 = vmatmul.msk.f32.vlgmr.msra.gmra.mxu1 %vm277_vm2, %v1364_v34 }
  0xa6   : > { %1376 = vmatpush.msk.msrb.mxu1 %vm281_vm1, %v587_v30  ;;  %1374 = vmatpush.msk.msrb.mxu0 %vm281_vm1, %v586_v35 }
  0xa7   : > { %1372 = vmatmul.msk.f32.vlgmr.msra.gmra.mxu3 %vm277_vm2, %v1364_v34  ;;  %1366 = vmatmul.msk.f32.vlgmr.msra.gmra.mxu0 %vm277_vm2, %v1364_v34 }
  0xa8   : > { %1452 = vset.pattern.permute.xlu1 %v1470_v8  ;;  %1453 = vset.pattern.permute.xlu0 %v1470_v8 }
  0xa9   : > { %v800_v47 = vpop.permute.xlu2 %799  ;;  %1248 = vperm.xlu1 %1452, %v1245_v7  }
  0xaa   : > { %v584_v36 = vpop.permute.xlu0 %583  ;;  %v694_v39 = vpop.permute.xlu1 %693 }
  0xab   : > { %v589_v38 = vsel %vm585_vm4, %v582_v15, %v584_v36  ;;  %v701_v41 = vsel %vm697_vm5, %v694_v39, %v696_v28 }
  0xac   : > { %1380 = vmatpush.msk.msrb.mxu3 %vm281_vm1, %v589_v38 }
  0xad   : > { %1379 = vmatmul.msk.f32.vlgmr.msrb.gmra.mxu2 %vm277_vm2, %v1373_v40  ;;  %1377 = vmatmul.msk.f32.vlgmr.msrb.gmra.mxu1 %vm277_vm2, %v1373_v40 }
  0xae   : > { %1389 = vmatpush.msk.msra.mxu3 %vm281_vm1, %v701_v41 }
  0xaf   : > { %1381 = vmatmul.msk.f32.vlgmr.msrb.gmra.mxu3 %vm277_vm2, %v1373_v40  ;;  %1375 = vmatmul.msk.f32.vlgmr.msrb.gmra.mxu0 %vm277_vm2, %v1373_v40 }
  0xb1   : > { %v918_v51 = vpop.permute.xlu2 %917 }
  0xb2   : > { %v692_v42 = vpop.permute.xlu0 %691  ;;  %v690_v44 = vpop.permute.xlu1 %689 }
  0xb3   : > { %v700_v43 = vsel %vm697_vm5, %v692_v42, %v694_v39  ;;  %v699_v46 = vsel %vm697_vm5, %v690_v44, %v692_v42 }
  0xb4   : > { %1387 = vmatpush.msk.msra.mxu2 %vm281_vm1, %v700_v43  ;;  %1385 = vmatpush.msk.msra.mxu1 %vm281_vm1, %v699_v46 }
  0xb5   : > { %1388 = vmatmul.msk.f32.vlgmr.msra.gmra.mxu2 %vm277_vm2, %v1382_v45  ;;  %1386 = vmatmul.msk.f32.vlgmr.msra.gmra.mxu1 %vm277_vm2, %v1382_v45 }
  0xb7   : > { %1390 = vmatmul.msk.f32.vlgmr.msra.gmra.mxu3 %vm277_vm2, %v1382_v45 }
  0xb9   : > { %v914_v58 = vpop.permute.xlu2 %913 }
  0xba   : > { %v688_v48 = vpop.permute.xlu0 %687  ;;  %v808_v50 = vpop.permute.xlu1 %807 }
  0xbb   : > { %v698_v49 = vsel %vm697_vm5, %v688_v48, %v690_v44 }
  0xbc   : > { %1383 = vmatpush.msk.msra.mxu0 %vm281_vm1, %v698_v49 }
  0xbd   : > { %1384 = vmatmul.msk.f32.vlgmr.msra.gmra.mxu0 %vm277_vm2, %v1382_v45 }
  0xc1   : > { %v1032_v2 = vpop.permute.xlu2 %1031 }
  0xc2   : > { %v806_v52 = vpop.permute.xlu0 %805  ;;  %v916_v56 = vpop.permute.xlu1 %915 }
  0xc3   : > { %v812_v54 = vsel %vm809_vm6, %v804_v37, %v806_v52  ;;  %v813_v55 = vsel %vm809_vm6, %v806_v52, %v808_v50  ;;  %v924_v57 = vsel %vm921_vm7, %v916_v56, %v918_v51  ;;  %v923_v62 = vsel %vm921_vm7, %v914_v58, %v916_v56 }
  0xc4   : > { %1396 = vmatpush.msk.msrb.mxu2 %vm281_vm1, %v812_v54  ;;  %1398 = vmatpush.msk.msrb.mxu3 %vm281_vm1, %v813_v55 }
  0xc5   : > { %1397 = vmatmul.msk.f32.vlgmr.msrb.gmra.mxu2 %vm277_vm2, %v1391_v53  ;;  %1399 = vmatmul.msk.f32.vlgmr.msrb.gmra.mxu3 %vm277_vm2, %v1391_v53 }
  0xc6   : > { %1405 = vmatpush.msk.msra.mxu2 %vm281_vm1, %v924_v57 }
  0xc9   : > { %v1140_v16 = vpop.permute.xlu2 %1139 }
  0xca   : > { %v802_v59 = vpop.permute.xlu0 %801  ;;  %v912_v0 = vpop.permute.xlu1 %911 }
  0xcb   : > { %v810_v60 = vsel %vm809_vm6, %v800_v47, %v802_v59  ;;  %v811_v61 = vsel %vm809_vm6, %v802_v59, %v804_v37  ;;  %v922_v1 = vsel %vm921_vm7, %v912_v0, %v914_v58 }
  0xcc   : > { %1392 = vmatpush.msk.msrb.mxu0 %vm281_vm1, %v810_v60  ;;  %1394 = vmatpush.msk.msrb.mxu1 %vm281_vm1, %v811_v61 }
  0xcd   : > { %1393 = vmatmul.msk.f32.vlgmr.msrb.gmra.mxu0 %vm277_vm2, %v1391_v53  ;;  %1395 = vmatmul.msk.f32.vlgmr.msrb.gmra.mxu1 %vm277_vm2, %v1391_v53 }
  0xce   : > { %1406 = vmatmul.msk.f32.vlgmr.msra.gmra.mxu2 %vm277_vm2, %v1400_v63  ;;  %1403 = vmatpush.msk.msra.mxu1 %vm281_vm1, %v923_v62 }
  0xcf   : > { %1401 = vmatpush.msk.msra.mxu0 %vm281_vm1, %v922_v1 }
  0xd1   : > { %v1136_v22 = vpop.permute.xlu2 %1135 }
  0xd2   : > { %v920_v3 = vpop.permute.xlu0 %919  ;;  %v1030_v5 = vpop.permute.xlu1 %1029 }
  0xd3   : > { %v925_v4 = vsel %vm921_vm7, %v918_v51, %v920_v3  ;;  %v1037_v6 = vsel %vm1033_vm8, %v1030_v5, %v1032_v2 }
  0xd4   : > { %1407 = vmatpush.msk.msra.mxu3 %vm281_vm1, %v925_v4 }
  0xd5   : > { %1402 = vmatmul.msk.f32.vlgmr.msra.gmra.mxu0 %vm277_vm2, %v1400_v63  ;;  %1404 = vmatmul.msk.f32.vlgmr.msra.gmra.mxu1 %vm277_vm2, %v1400_v63 }
  0xd6   : > { %1408 = vmatmul.msk.f32.vlgmr.msra.gmra.mxu3 %vm277_vm2, %v1400_v63 }
  0xd7   : > { %1416 = vmatpush.msk.msrb.mxu3 %vm281_vm1, %v1037_v6 }
  0xda   : > { %v1028_v9 = vpop.permute.xlu0 %1027  ;;  %v1026_v12 = vpop.permute.xlu1 %1025 }
  0xdb   : > { %v1036_v11 = vsel %vm1033_vm8, %v1028_v9, %v1030_v5  ;;  %v1035_v13 = vsel %vm1033_vm8, %v1026_v12, %v1028_v9 }
  0xdc   : > { %1414 = vmatpush.msk.msrb.mxu2 %vm281_vm1, %v1036_v11  ;;  %1412 = vmatpush.msk.msrb.mxu1 %vm281_vm1, %v1035_v13 }
  0xdd   : > { %1415 = vmatmul.msk.f32.vlgmr.msrb.gmra.mxu2 %vm277_vm2, %v1409_v10  ;;  %1413 = vmatmul.msk.f32.vlgmr.msrb.gmra.mxu1 %vm277_vm2, %v1409_v10 }
  0xde   : > { %1417 = vmatmul.msk.f32.vlgmr.msrb.gmra.mxu3 %vm277_vm2, %v1409_v10 }
  0xe2   : > { %v1024_v14 = vpop.permute.xlu0 %1023  ;;  %v1144_v17 = vpop.permute.xlu1 %1143 }
  0xe3   : > { %v1034_v15 = vsel %vm1033_vm8, %v1024_v14, %v1026_v12 }
  0xe4   : > { %1410 = vmatpush.msk.msrb.mxu0 %vm281_vm1, %v1034_v15 }
  0xe5   : > { %1411 = vmatmul.msk.f32.vlgmr.msrb.gmra.mxu0 %vm277_vm2, %v1409_v10 }
  0xea   : > { %v1142_v18 = vpop.permute.xlu0 %1141 }
  0xeb   : > { %v1148_v20 = vsel %vm1145_vm9, %v1140_v16, %v1142_v18  ;;  %v1149_v21 = vsel %vm1145_vm9, %v1142_v18, %v1144_v17 }
  0xec   : > { %1423 = vmatpush.msk.msra.mxu2 %vm281_vm1, %v1148_v20  ;;  %1425 = vmatpush.msk.msra.mxu3 %vm281_vm1, %v1149_v21 }
  0xed   : > { %1424 = vmatmul.msk.f32.vlgmr.msra.gmra.mxu2 %vm277_vm2, %v1418_v19  ;;  %1426 = vmatmul.msk.f32.vlgmr.msra.gmra.mxu3 %vm277_vm2, %v1418_v19 }
  0xf2   : > { %v1138_v23 = vpop.permute.xlu0 %1137 }
  0xf3   : > { %v1147_v24 = vsel %vm1145_vm9, %v1138_v23, %v1140_v16  ;;  %v1146_v25 = vsel %vm1145_vm9, %v1136_v22, %v1138_v23 }
  0xf4   : > { %1419 = vmatpush.msk.msra.mxu0 %vm281_vm1, %v1146_v25  ;;  %1421 = vmatpush.msk.msra.mxu1 %vm281_vm1, %v1147_v24 }
  0xf5   : > { %1420 = vmatmul.msk.f32.vlgmr.msra.gmra.mxu0 %vm277_vm2, %v1418_v19  ;;  %1422 = vmatmul.msk.f32.vlgmr.msra.gmra.mxu1 %vm277_vm2, %v1418_v19 }
 0x10a   : > { %v327_v29 = vpop.f32.mrf.mxu1 }
 0x114   : > { %v307_v28 = vpop.f32.mrf.mxu0 }
 0x115   : > { %v418_v33 = vpop.f32.mrf.mxu1 }
 0x116   : > { %v419_v53 = vadd.f32 %v418_v33, %v327_v29 }
 0x118   : > { %v347_v26 = vpop.f32.mrf.mxu2 }
 0x11a   : > { %v367_v27 = vpop.f32.mrf.mxu3 }
 0x11b   : > { %v1249_v20 = vpop.permute.xlu1 %1248 }
 0x11c   : > { %v398_v32 = vpop.f32.mrf.mxu0 }
 0x11d   : > { %v399_v55 = vadd.f32 %v398_v32, %v307_v28 }
 0x120   : > { %v438_v30 = vpop.f32.mrf.mxu2 }
 0x121   : > { %v439_v50 = vadd.f32 %v438_v30, %v347_v26 }
 0x122   : > { %v458_v31 = vpop.f32.mrf.mxu3  ;;  %v526_v37 = vpop.f32.mrf.mxu1 }
 0x123   : > { %v459_v51 = vadd.f32 %v458_v31, %v367_v27  ;;  %v570_v60 = vadd.f32 %v526_v37, %v419_v53 }
 0x124   : > { %v506_v36 = vpop.f32.mrf.mxu0 }
 0x125   : > { %v569_v61 = vadd.f32 %v506_v36, %v399_v55 }
 0x128   : > { %v546_v34 = vpop.f32.mrf.mxu2 }
 0x129   : > { %v571_v56 = vadd.f32 %v546_v34, %v439_v50 }
 0x12a   : > { %v566_v35 = vpop.f32.mrf.mxu3  ;;  %v638_v41 = vpop.f32.mrf.mxu1 }
 0x12b   : > { %v572_v57 = vadd.f32 %v566_v35, %v459_v51  ;;  %v682_v0 = vadd.f32 %v638_v41, %v570_v60 }
 0x12c   : > { %v618_v40 = vpop.f32.mrf.mxu0 }
 0x12d   : > { %v681_v3 = vadd.f32 %v618_v40, %v569_v61 }
 0x130   : > { %v658_v38 = vpop.f32.mrf.mxu2 }
 0x131   : > { %v683_v62 = vadd.f32 %v658_v38, %v571_v56 }
 0x132   : > { %v678_v39 = vpop.f32.mrf.mxu3  ;;  %v750_v45 = vpop.f32.mrf.mxu1 }
 0x133   : > { %v684_v63 = vadd.f32 %v678_v39, %v572_v57  ;;  %v794_v9 = vadd.f32 %v750_v45, %v682_v0 }
 0x138   : > { %v770_v42 = vpop.f32.mrf.mxu2 }
 0x139   : > { %v795_v4 = vadd.f32 %v770_v42, %v683_v62 }
 0x13a   : > { %v790_v43 = vpop.f32.mrf.mxu3  ;;  %v730_v44 = vpop.f32.mrf.mxu0 }
 0x13b   : > { %v796_v5 = vadd.f32 %v790_v43, %v684_v63  ;;  %v793_v8 = vadd.f32 %v730_v44, %v681_v3 }
 0x148   : > { %v882_v46 = vpop.f32.mrf.mxu2  ;;  %v902_v47 = vpop.f32.mrf.mxu3 }
 0x149   : > { %v907_v10 = vadd.f32 %v882_v46, %v795_v4  ;;  %v908_v11 = vadd.f32 %v902_v47, %v796_v5 }
 0x14a   : > { %v842_v48 = vpop.f32.mrf.mxu0  ;;  %v862_v49 = vpop.f32.mrf.mxu1 }
 0x14b   : > { %v905_v12 = vadd.f32 %v842_v48, %v793_v8  ;;  %v906_v13 = vadd.f32 %v862_v49, %v794_v9 }
 0x151   : > { %v994_v54 = vpop.f32.mrf.mxu2 }
 0x152   : > { %v954_v58 = vpop.f32.mrf.mxu0  ;;  %v974_v59 = vpop.f32.mrf.mxu1  ;;  %v1019_v14 = vadd.f32 %v994_v54, %v907_v10 }
 0x153   : > { %v1017_v16 = vadd.f32 %v954_v58, %v905_v12  ;;  %v1018_v17 = vadd.f32 %v974_v59, %v906_v13 }
 0x159   : > { %v1014_v52 = vpop.f32.mrf.mxu3 }
 0x15a   : > { %v1086_v6 = vpop.f32.mrf.mxu1  ;;  %v1020_v15 = vadd.f32 %v1014_v52, %v908_v11 }
 0x15b   : > { %v1130_v23 = vadd.f32 %v1086_v6, %v1018_v17 }
 0x160   : > { %v1106_v1 = vpop.f32.mrf.mxu2 }
 0x161   : > { %v1126_v2 = vpop.f32.mrf.mxu3  ;;  %v1131_v18 = vadd.f32 %v1106_v1, %v1019_v14 }
 0x162   : > { %v1066_v7 = vpop.f32.mrf.mxu0  ;;  %v1132_v19 = vadd.f32 %v1126_v2, %v1020_v15 }
 0x163   : > { %v1129_v24 = vadd.f32 %v1066_v7, %v1017_v16 }
 0x170   : > { %v1218_v21 = vpop.f32.mrf.mxu2  ;;  %v1238_v22 = vpop.f32.mrf.mxu3 }
 0x171   : > { %v1243_v25 = vadd.f32 %v1218_v21, %v1131_v18  ;;  %v1244_v26 = vadd.f32 %v1238_v22, %v1132_v19 }
 0x172   : > { %v1178_v27 = vpop.f32.mrf.mxu0  ;;  %v1198_v28 = vpop.f32.mrf.mxu1 }
 0x173   : > { %v1241_v29 = vadd.f32 %v1178_v27, %v1129_v24  ;;  %v1242_v30 = vadd.f32 %v1198_v28, %v1130_v23  ;;  %v1253_v31 = vadd.f32 %v1249_v20, %v1243_v25  ;;  %v1254_v32 = vadd.f32 %v1249_v20, %v1244_v26 }
 0x175   : > { %v1251_v33 = vadd.f32 %v1249_v20, %v1241_v29  ;;  %v1252_v34 = vadd.f32 %v1249_v20, %v1242_v30  ;;  %v1257_v35 = vmax.f32 %v1253_v31, 0.0  ;;  %v1258_v36 = vmax.f32 %v1254_v32, 0.0 }
 0x177   : > { %v1255_v37 = vmax.f32 %v1251_v33, 0.0  ;;  %v1256_v38 = vmax.f32 %v1252_v34, 0.0  ;;  %1261 = vst [vmem:[%s244_s8 + $0x10] sm:$0xff] %v1257_v35 }
 0x178   : > { %1262 = vst [vmem:[%s244_s8 + $0x18] sm:$0xff] %v1258_v36 }
 0x179   : > { %1259 = vst [vmem:[%s244_s8] sm:$0xff] %v1255_v37 }
 0x17a   : > { %1260 = vst [vmem:[%s244_s8 + $0x8] sm:$0xff] %v1256_v38 }
 0x17b PF: > { %s14_s15 = sadd.s32 1, %s1460_s15  }
 0x17c   : > { %p11_p5 = scmp.ge.s32.totalorder %s14_s15, 13  }
 0x17e   :  { %13 = sbr.rel (!%p11_p5) target bundleno = 1 (0x1), region = 78 }

// kernel: sep_conv3d.3
= control target key start
LH: loop header
LB: loop body
LE: loop exit
PB: predicated region body
PF: predicated region fallthrough
CT: control target
= control target key end

     0   :  { %s668_s15 = smov 0   ;;  %s719_s0 = inlined_call_operand.vmem [shape: f32[8,5632], index: 0, kind: input, shape index: {}, may-alias: {0,1}]   ;;  %s720_s1 = inlined_call_operand.vmem [shape: f32[8,5632], index: 1, kind: input, shape index: {}, may-alias: {0,1}]   ;;  %s721_s2 = inlined_call_operand.vmem [shape: f32[3,8,8], index: 2, kind: input, shape index: {}]   ;;  %s722_s3 = inlined_call_operand.vmem [shape: f32[8,1], index: 3, kind: input, shape index: {}]   ;;  %s723_s4 = inlined_call_operand.vmem [shape: f32[8,5632], index: 4, kind: output, shape index: {}]  }
   0x1 LB: > { %s597_s16 = sadd.s32 4294967295, %s640_s15   ;;  %p601_p0 = scmp.ge.s32.totalorder %s640_s15, 1  ;;  %s640_s15 = sphi %s668_s15, %s14_s15  }
   0x2   : > { %p186_p1 = scmp.lt.s32.totalorder %s640_s15, 12 }
   0x4   : > { %p187_p2 = pnand %p601_p0, %p186_p1 }
   0x5   : > { %s602_s17 = sshll.u32 (!%p187_p2), %s597_s16, 2  ;;  %s226_s18 = sadd.s32 (!%p187_p2), 1, %s597_s16 }
   0x6   : > { %190 = sbr.rel (%p187_p2) target bundleno = 176 (0xb0), region = 36  ;;  %p221_p3 = scmp.lt.s32.totalorder (!%p187_p2), %s602_s17, 43 }
   0x7   : > { %p227_p4 = scmp.lt.s32.totalorder (!%p187_p2), %s226_s18, 10 }
   0xb   : > { %v511_v0 = vld [vmem:[%s722_s3] sm:$0xff]  ;;  %v642_v1 = vmov 0   ;;  %s725_s17 = smov (!%p221_p3, %s602_s17), 43  ;;  %s727_s18 = smov (!%p227_p4, %s226_s18), 10  ;;  %v608_v2 = vld [vmem:[%s721_s2 + $0x8] sm:$0xff]  ;;  %vm255_vm0 = vcmask 64512  }
   0xc   : > { %633 = vset.pattern.permute.xlu0 %v642_v1  ;;  %s603_s21 = sshll.u32 %s725_s17, 3  ;;  %s604_s27 = sshll.u32 %s727_s18, 2  ;;  %v252_v9 = vld [vmem:[%s721_s2] sm:$0xff]  ;;  %v617_v12 = vld [vmem:[%s721_s2 + $0x10] sm:$0xff] }
   0xd   : > { %514 = vperm.xlu0 %633, %v511_v0   ;;  %s224_s24 = scalar_lea.vmem %s719_s0, %s603_s21  ;;  %p230_p5 = scmp.lt.s32.totalorder %s604_s27, 43 }
   0xe   : > { %v246_v3 = vld [vmem:[%s224_s24 + $0x10] sm:$0xff]  ;;  %v247_v4 = vld [vmem:[%s224_s24 + $0x18] sm:$0xff]  ;;  %v244_v5 = vld [vmem:[%s224_s24] sm:$0xff]  ;;  %s242_s12 = scalar_lea.vmem %s723_s4, %s603_s21 }
   0xf   : > { %274 = vmatpush.msra.mxu0 %v246_v3  ;;  %294 = vmatpush.msra.mxu1 %v247_v4  ;;  %v245_v6 = vld [vmem:[%s224_s24 + $0x8] sm:$0xff]  ;;  %s729_s27 = smov (!%p230_p5, %s604_s27), 43 }
  0x10   : > { %609 = vmatmul.msk.f32.vlgmr.msra.gmra.mxu0 %vm255_vm0, %v608_v2  ;;  %610 = vmatmul.msk.f32.vlgmr.msra.gmra.mxu1 %vm255_vm0, %v608_v2  ;;  %s605_s28 = sshll.u32 %s729_s27, 3 }
  0x11   : > { %357 = vmatpush.msrb.mxu0 %v244_v5  ;;  %377 = vmatpush.msrb.mxu1 %v245_v6  ;;  %s233_s5 = scalar_lea.vmem %s720_s1, %s605_s28 }
  0x12   : > { %v248_v7 = vld [vmem:[%s233_s5] sm:$0xff]  ;;  %v249_v8 = vld [vmem:[%s233_s5 + $0x8] sm:$0xff]  ;;  %v250_v10 = vld [vmem:[%s233_s5 + $0x10] sm:$0xff] }
  0x13   : > { %314 = vmatpush.msra.mxu2 %v248_v7  ;;  %334 = vmatpush.msra.mxu3 %v249_v8  ;;  %v251_v11 = vld [vmem:[%s233_s5 + $0x18] sm:$0xff] }
  0x14   : > { %611 = vmatmul.msk.f32.vlgmr.msra.gmra.mxu2 %vm255_vm0, %v608_v2  ;;  %612 = vmatmul.msk.f32.vlgmr.msra.gmra.mxu3 %vm255_vm0, %v608_v2 }
  0x15   : > { %397 = vmatpush.msrb.mxu2 %v246_v3  ;;  %417 = vmatpush.msrb.mxu3 %v247_v4 }
  0x16   : > { %442 = vmatpush.msra.mxu0 %v248_v7  ;;  %462 = vmatpush.msra.mxu1 %v249_v8 }
  0x17   : > { %482 = vmatpush.msra.mxu2 %v250_v10  ;;  %502 = vmatpush.msra.mxu3 %v251_v11 }
  0x18   : > { %613 = vmatmul.msk.f32.vlgmr.msrb.gmra.mxu0 %vm255_vm0, %v252_v9  ;;  %614 = vmatmul.msk.f32.vlgmr.msrb.gmra.mxu1 %vm255_vm0, %v252_v9 }
  0x1c   : > { %615 = vmatmul.msk.f32.vlgmr.msrb.gmra.mxu2 %vm255_vm0, %v252_v9  ;;  %616 = vmatmul.msk.f32.vlgmr.msrb.gmra.mxu3 %vm255_vm0, %v252_v9 }
  0x20   : > { %618 = vmatmul.msk.f32.vlgmr.msra.gmra.mxu0 %vm255_vm0, %v617_v12  ;;  %619 = vmatmul.msk.f32.vlgmr.msra.gmra.mxu1 %vm255_vm0, %v617_v12 }
  0x24   : > { %620 = vmatmul.msk.f32.vlgmr.msra.gmra.mxu2 %vm255_vm0, %v617_v12  ;;  %621 = vmatmul.msk.f32.vlgmr.msra.gmra.mxu3 %vm255_vm0, %v617_v12 }
  0x7f   : > { %v515_v21 = vpop.permute.xlu0 %514 }
  0x8d   : > { %v276_v13 = vpop.f32.mrf.mxu0  ;;  %v296_v14 = vpop.f32.mrf.mxu1 }
  0x95   : > { %v359_v15 = vpop.f32.mrf.mxu0  ;;  %v379_v16 = vpop.f32.mrf.mxu1 }
  0x96   : > { %v360_v19 = vadd.f32 %v359_v15, %v276_v13  ;;  %v380_v20 = vadd.f32 %v379_v16, %v296_v14 }
  0x97   : > { %v316_v17 = vpop.f32.mrf.mxu2  ;;  %v336_v18 = vpop.f32.mrf.mxu3 }
  0x9d   : > { %v444_v22 = vpop.f32.mrf.mxu0  ;;  %v464_v23 = vpop.f32.mrf.mxu1 }
  0x9e   : > { %v507_v24 = vadd.f32 %v444_v22, %v360_v19  ;;  %v508_v25 = vadd.f32 %v464_v23, %v380_v20 }
  0x9f   : > { %v399_v28 = vpop.f32.mrf.mxu2  ;;  %v419_v29 = vpop.f32.mrf.mxu3 }
  0xa0   : > { %v517_v26 = vadd.f32 %v515_v21, %v507_v24  ;;  %v518_v27 = vadd.f32 %v515_v21, %v508_v25  ;;  %v400_v32 = vadd.f32 %v399_v28, %v316_v17  ;;  %v420_v33 = vadd.f32 %v419_v29, %v336_v18 }
  0xa2   : > { %v521_v30 = vmax.f32 %v517_v26, 0.0  ;;  %v522_v31 = vmax.f32 %v518_v27, 0.0 }
  0xa4   : > { %525 = vst [vmem:[%s242_s12] sm:$0xff] %v521_v30 }
  0xa5   : > { %526 = vst [vmem:[%s242_s12 + $0x8] sm:$0xff] %v522_v31 }
  0xa7   : > { %v484_v34 = vpop.f32.mrf.mxu2  ;;  %v504_v35 = vpop.f32.mrf.mxu3 }
  0xa8   : > { %v509_v36 = vadd.f32 %v484_v34, %v400_v32  ;;  %v510_v37 = vadd.f32 %v504_v35, %v420_v33 }
  0xaa   : > { %v519_v38 = vadd.f32 %v515_v21, %v509_v36  ;;  %v520_v39 = vadd.f32 %v515_v21, %v510_v37 }
  0xac   : > { %v523_v40 = vmax.f32 %v519_v38, 0.0  ;;  %v524_v41 = vmax.f32 %v520_v39, 0.0 }
  0xae   : > { %527 = vst [vmem:[%s242_s12 + $0x10] sm:$0xff] %v523_v40 }
  0xaf   : > { %528 = vst [vmem:[%s242_s12 + $0x18] sm:$0xff] %v524_v41 }
  0xb0 PF: > { %s14_s15 = sadd.s32 1, %s640_s15  }
  0xb1   : > { %p11_p6 = scmp.ge.s32.totalorder %s14_s15, 13  }
  0xb3   :  { %13 = sbr.rel (!%p11_p6) target bundleno = 1 (0x1), region = 71 }

</bundles_post_ra>
